<compile_context>
chip_gen: v7x
topology: tpu7x:2x2x1
jax: 0.10.0
libtpu: 0.0.40
codegen_flags: <defaults>
</compile_context>

<pallas_src>
import jax
import jax.numpy as jnp
from jax.experimental import pallas as pl
from jax.experimental.pallas import tpu as pltpu


def _round_up(x, m):
    return ((x + m - 1) // m) * m


# ------------------------------------------------------ fused edge kernel ----
def _edge_message_kernel(rv_ref, hf_ref, hr_ref, cjf_ref, cjr_ref, rhs_ref, m_ref):
    # rv_ref : [TE, D]     f32   per-edge review features (read once for fwd+rev)
    # hf_ref : [TE, D]     bf16  gathered fwd src rows (user weight table)
    # hr_ref : [TE, D]     bf16  gathered rev src rows (movie weight table)
    # cjf_ref: [TE, 1]     f32   cj_user[src]
    # cjr_ref: [TE, 1]     f32   cj_movie[dst]
    # rhs_ref: [D, 2D+4]   bf16  [Wrw_f^T | Wrw_r^T | wp_f^T ws_f^T wp_r^T ws_r^T]
    # m_ref  : [TE, 2D]    bf16  [m_fwd | m_rev]  (64-lane store for D=32)
    D = rv_ref.shape[1]
    rv_bf = rv_ref[...].astype(jnp.bfloat16)

    # One MXU matmul gives rf for both directions AND all four gate logits.
    mm = jnp.dot(rv_bf, rhs_ref[...], preferred_element_type=jnp.float32)  # [TE, 2D+4]
    rf_f = mm[:, :D]
    rf_r = mm[:, D:2 * D]
    gates = jax.nn.sigmoid(mm[:, 2 * D:2 * D + 4])        # [TE, 4] f32
    pa_f, ra_f = gates[:, 0:1], gates[:, 1:2]
    pa_r, ra_r = gates[:, 2:3], gates[:, 3:4]

    hf = hf_ref[...].astype(jnp.float32)
    hr = hr_ref[...].astype(jnp.float32)

    # dropout_rate = 0.0 -> dropout(cj) == cj
    m_f = (hf * pa_f + rf_f * ra_f) * cjf_ref[...]
    m_r = (hr * pa_r + rf_r * ra_r) * cjr_ref[...]
    m_ref[...] = jnp.concatenate([m_f, m_r], axis=-1).astype(jnp.bfloat16)


def edge_messages_fused(rv, hf, hr, cjf, cjr, rhs_bf16, *, tile_e=4096):
    """Fused fwd+rev GCMCGraphConv messages for one rating. Returns [E, 2D] bf16."""
    E, D = rv.shape
    tile = min(tile_e, _round_up(E, 16))                  # bf16 sublane packing: 16
    grid = (pl.cdiv(E, tile),)                            # partial last block masked
    return pl.pallas_call(
        _edge_message_kernel,
        out_shape=jax.ShapeDtypeStruct((E, 2 * D), jnp.bfloat16),
        grid_spec=pltpu.PrefetchScalarGridSpec(
            num_scalar_prefetch=0,
            grid=grid,
            in_specs=[
                pl.BlockSpec((tile, D), lambda i: (i, 0)),        # review_feat tile
                pl.BlockSpec((tile, D), lambda i: (i, 0)),        # fwd src rows
                pl.BlockSpec((tile, D), lambda i: (i, 0)),        # rev src rows
                pl.BlockSpec((tile, 1), lambda i: (i, 0)),        # cj fwd
                pl.BlockSpec((tile, 1), lambda i: (i, 0)),        # cj rev
                pl.BlockSpec((D, 2 * D + 4), lambda i: (0, 0)),   # fused RHS (resident)
            ],
            out_specs=pl.BlockSpec((tile, 2 * D), lambda i: (i, 0)),
        ),
        compiler_params=pltpu.CompilerParams(
            dimension_semantics=("parallel",)),
    )(rv, hf, hr, cjf, cjr, rhs_bf16)


# ------------------------------------------------------------ node kernel ----
def _node_output_kernel(agg_ref, ci_ref, wfc_ref, b_ref, out_ref):
    # agg_ref: [TN, D] f32   summed messages per dst node (over all etypes)
    # ci_ref : [TN, 1] f32   dst-node normalisation
    # wfc_ref: [D, D]  bf16  fc.weight^T (resident)
    # b_ref  : [1, D]  f32   fc.bias
    h = agg_ref[...] * ci_ref[...]
    h = jax.nn.gelu(h, approximate=False)     # nn.GELU() default = exact erf, in f32
    y = jnp.dot(h.astype(jnp.bfloat16), wfc_ref[...],
                preferred_element_type=jnp.float32)
    out_ref[...] = y + b_ref[...]


def node_output(agg, ci, wfc_t_bf16, bias_row, *, tile_n=4096):
    """rst = GELU(agg * ci) @ W_fc^T + b, tiled over nodes. Returns [N, D] f32."""
    N, D = agg.shape
    tile = min(tile_n, _round_up(N, 8))
    grid = (pl.cdiv(N, tile),)
    return pl.pallas_call(
        _node_output_kernel,
        out_shape=jax.ShapeDtypeStruct((N, D), jnp.float32),
        grid_spec=pltpu.PrefetchScalarGridSpec(
            num_scalar_prefetch=0,
            grid=grid,
            in_specs=[
                pl.BlockSpec((tile, D), lambda i: (i, 0)),
                pl.BlockSpec((tile, 1), lambda i: (i, 0)),
                pl.BlockSpec((D, D), lambda i: (0, 0)),
                pl.BlockSpec((1, D), lambda i: (0, 0)),
            ],
            out_specs=pl.BlockSpec((tile, D), lambda i: (i, 0)),
        ),
        compiler_params=pltpu.CompilerParams(
            dimension_semantics=("parallel",)),
    )(agg, ci, wfc_t_bf16, bias_row)


# -------------------------------------------------------- layer forward -----
def gcmc_layer_forward(edges, node_data, kparams, *, tile_e=4096, tile_n=4096):
    """edges: {rating: (src_user_idx [E], dst_movie_idx [E], review_feat [E, D])}
       node_data: cj_user/ci_user [U,1], cj_movie/ci_movie [M,1]
       kparams: kernel-layout parameters (pre-transposed / pre-cast once)."""
    num_users = node_data["cj_user"].shape[0]
    num_movies = node_data["cj_movie"].shape[0]
    D = kparams["ufc"]["w_t"].shape[0]

    agg_user = jnp.zeros((num_users, D), jnp.float32)
    agg_movie = jnp.zeros((num_movies, D), jnp.float32)

    for rating, (src_u, dst_m, rv) in edges.items():
        p = kparams["conv"][rating]
        # Src-row / cj gathers stay in XLA (bf16 rows -> half the gathered bytes).
        # TODO(synk): fuse the gather + dst segment-sum into the Pallas pipeline
        # (sorted-edge manual DMA + scalar-prefetched per-dst-block offsets) to
        # remove the [E, 2D] message HBM round trip entirely.
        hf = p["w_fwd"][src_u]                        # [E, D] bf16
        hr = p["w_rev"][dst_m]                        # [E, D] bf16
        cjf = node_data["cj_user"][src_u]             # [E, 1] f32
        cjr = node_data["cj_movie"][dst_m]            # [E, 1] f32

        m = edge_messages_fused(rv, hf, hr, cjf, cjr, p["rhs"], tile_e=tile_e)
        m_f = m[:, :D].astype(jnp.float32)            # fwd: user -> movie
        m_r = m[:, D:].astype(jnp.float32)            # rev: movie -> user
        agg_movie = agg_movie + jax.ops.segment_sum(m_f, dst_m, num_segments=num_movies)
        agg_user = agg_user + jax.ops.segment_sum(m_r, src_u, num_segments=num_users)

    # ci scaling factors out of the sum over etypes; GELU + fc per node type.
    # (GCMCLayer dropout_rate = 0.0 -> identity.)
    ufeat = node_output(agg_user, node_data["ci_user"],
                        kparams["ufc"]["w_t"], kparams["ufc"]["b"], tile_n=tile_n)
    ifeat = node_output(agg_movie, node_data["ci_movie"],
                        kparams["ifc"]["w_t"], kparams["ifc"]["b"], tile_n=tile_n)
    return ufeat, ifeat


# ------------------------------------------------------------- parameters ---
def xavier_uniform(key, shape):
    fan_out, fan_in = shape
    bound = (6.0 / (fan_in + fan_out)) ** 0.5
    return jax.random.uniform(key, shape, jnp.float32, -bound, bound)


def make_params(key, rating_vals, num_users, num_movies, out_units):
    keys = iter(jax.random.split(key, 8 * len(rating_vals) + 8))
    D = out_units
    raw = {"conv": {}}
    for r in rating_vals:
        for tag, n_src in (("fwd", num_users), ("rev", num_movies)):
            raw["conv"][(tag, r)] = {
                "weight": xavier_uniform(next(keys), (n_src, D)),    # Parameter(in_feats, out_feats)
                "prob_w": xavier_uniform(next(keys), (1, D)),        # prob_score.weight
                "score_w": xavier_uniform(next(keys), (1, D)),       # review_score.weight
                "review_w": xavier_uniform(next(keys), (D, D)),      # review_w.weight
            }
    for name in ("ufc", "ifc"):
        raw[name] = {
            "weight": xavier_uniform(next(keys), (D, D)),
            "bias": jax.random.uniform(next(keys), (D,), jnp.float32, -0.1, 0.1),
        }
    return raw


def to_kernel_params(raw, rating_vals):
    """Hoisted once: fused fwd+rev RHS (matmul + gate columns), bf16 casts, transposes."""
    kp = {"conv": {}}
    for r in rating_vals:
        pf = raw["conv"][("fwd", r)]
        pr = raw["conv"][("rev", r)]
        rhs = jnp.concatenate(
            [pf["review_w"].T, pr["review_w"].T,               # [D, D] each
             pf["prob_w"].T, pf["score_w"].T,                  # [D, 1] each
             pr["prob_w"].T, pr["score_w"].T],
            axis=1).astype(jnp.bfloat16)                       # [D, 2D+4]
        kp["conv"][r] = {
            "rhs": rhs,
            "w_fwd": pf["weight"].astype(jnp.bfloat16),        # gather table (user rows)
            "w_rev": pr["weight"].astype(jnp.bfloat16),        # gather table (movie rows)
        }
    for name in ("ufc", "ifc"):
        kp[name] = {
            "w_t": raw[name]["weight"].T.astype(jnp.bfloat16),
            "b": raw[name]["bias"].reshape(1, -1),
        }
    return kp


# --------------------------------------------------------------- reference --
def reference_forward(edges, node_data, raw):
    num_users = node_data["cj_user"].shape[0]
    num_movies = node_data["cj_movie"].shape[0]
    D = raw["ufc"]["weight"].shape[0]
    agg_u = jnp.zeros((num_users, D), jnp.float32)
    agg_m = jnp.zeros((num_movies, D), jnp.float32)
    for r, (src_u, dst_m, rv) in edges.items():
        pf = raw["conv"][("fwd", r)]
        pa = jax.nn.sigmoid(rv @ pf["prob_w"].T)
        ra = jax.nn.sigmoid(rv @ pf["score_w"].T)
        rf = rv @ pf["review_w"].T
        m = (pf["weight"][src_u] * pa + rf * ra) * node_data["cj_user"][src_u]
        agg_m = agg_m + jax.ops.segment_sum(m, dst_m, num_segments=num_movies)

        pr = raw["conv"][("rev", r)]
        pa = jax.nn.sigmoid(rv @ pr["prob_w"].T)
        ra = jax.nn.sigmoid(rv @ pr["score_w"].T)
        rf = rv @ pr["review_w"].T
        m = (pr["weight"][dst_m] * pa + rf * ra) * node_data["cj_movie"][dst_m]
        agg_u = agg_u + jax.ops.segment_sum(m, src_u, num_segments=num_users)

    uf = jax.nn.gelu(agg_u * node_data["ci_user"], approximate=False)
    uf = uf @ raw["ufc"]["weight"].T + raw["ufc"]["bias"]
    if_ = jax.nn.gelu(agg_m * node_data["ci_movie"], approximate=False)
    if_ = if_ @ raw["ifc"]["weight"].T + raw["ifc"]["bias"]
    return uf, if_


# --------------------------------------------------------------------- main -
if __name__ == "__main__":
    rating_vals = ["1", "2"]
    out_units = 32
    num_users = 40       # == user_in_units (GCMC identity-feature trick)
    num_movies = 56      # == movie_in_units
    edges_per_rating = {"1": 200, "2": 177}

    key = jax.random.PRNGKey(0)
    k_graph, k_param = jax.random.split(key)

    gkeys = iter(jax.random.split(k_graph, 16))
    edges = {}
    for r in rating_vals:
        E = edges_per_rating[r]
        src = jax.random.randint(next(gkeys), (E,), 0, num_users)
        dst = jax.random.randint(next(gkeys), (E,), 0, num_movies)
        rv = jax.random.normal(next(gkeys), (E, out_units), jnp.float32)
        edges[r] = (src, dst, rv)

    node_data = {
        "cj_user": jax.random.uniform(next(gkeys), (num_users, 1), jnp.float32, 0.2, 1.0),
        "ci_user": jax.random.uniform(next(gkeys), (num_users, 1), jnp.float32, 0.2, 1.0),
        "cj_movie": jax.random.uniform(next(gkeys), (num_movies, 1), jnp.float32, 0.2, 1.0),
        "ci_movie": jax.random.uniform(next(gkeys), (num_movies, 1), jnp.float32, 0.2, 1.0),
    }

    raw = make_params(k_param, rating_vals, num_users, num_movies, out_units)
    kparams = to_kernel_params(raw, rating_vals)

    # Small explicit tiles in the demo exercise multi-step grids + masked partial
    # blocks; production default is 4096-row tiles (review: step-overhead-bound at 512).
    ufeat, ifeat = gcmc_layer_forward(edges, node_data, kparams, tile_e=64, tile_n=16)
    ufeat = jax.block_until_ready(ufeat)
    ifeat = jax.block_until_ready(ifeat)

    # Pure-JAX f32 reference of the same math; tolerance loosened because the kernel
    # uses bf16 MXU operands (incl. gate rows) and bf16 message storage.
    ref_u, ref_i = reference_forward(edges, node_data, raw)

    assert ufeat.shape == (num_users, out_units)
    assert ifeat.shape == (num_movies, out_units)
    assert jnp.allclose(ufeat, ref_u, atol=5e-2, rtol=5e-2), \
        float(jnp.max(jnp.abs(ufeat - ref_u)))
    assert jnp.allclose(ifeat, ref_i, atol=5e-2, rtol=5e-2), \
        float(jnp.max(jnp.abs(ifeat - ref_i)))

    print("KERNEL_OK")
</pallas_src>

<mosaic_0001>
module attributes {stable_mosaic.version = 11 : i64} {
  func.func @_edge_message_kernel(%arg0: i32, %arg1: memref<64x32xf32, #tpu.memory_space<vmem>>, %arg2: memref<64x32xbf16, #tpu.memory_space<vmem>>, %arg3: memref<64x32xbf16, #tpu.memory_space<vmem>>, %arg4: memref<64x1xf32, #tpu.memory_space<vmem>>, %arg5: memref<64x1xf32, #tpu.memory_space<vmem>>, %arg6: memref<32x68xbf16, #tpu.memory_space<vmem>>, %arg7: memref<64x64xbf16, #tpu.memory_space<vmem>>) attributes {dimension_semantics = [#tpu.dimension_semantics<parallel>], iteration_bounds = array<i64: 4>, scalar_prefetch = 0 : i64, scratch_operands = 0 : i64, tpu.core_type = #tpu.core_type<tc>, window_params = [{transform_indices = @transform_0, window_bounds = array<i64: 64, 32>}, {transform_indices = @transform_1, window_bounds = array<i64: 64, 32>}, {transform_indices = @transform_2, window_bounds = array<i64: 64, 32>}, {transform_indices = @transform_3, window_bounds = array<i64: 64, 1>}, {transform_indices = @transform_4, window_bounds = array<i64: 64, 1>}, {pipeline_mode = #tpu.pipeline_mode<synchronous>, transform_indices = @transform_5, window_bounds = array<i64: 32, 68>}, {transform_indices = @transform_6, window_bounds = array<i64: 64, 64>}]} {
    %c0 = arith.constant 0 : index
    %c0_0 = arith.constant 0 : index
    %0 = vector.load %arg1[%c0, %c0_0] : memref<64x32xf32, #tpu.memory_space<vmem>>, vector<64x32xf32>
    %1 = arith.truncf %0 : vector<64x32xf32> to vector<64x32xbf16>
    %c0_1 = arith.constant 0 : index
    %c0_2 = arith.constant 0 : index
    %2 = vector.load %arg6[%c0_1, %c0_2] : memref<32x68xbf16, #tpu.memory_space<vmem>>, vector<32x68xbf16>
    %cst = arith.constant dense<0.000000e+00> : vector<64x68xf32>
    %3 = tpu.matmul %1, %2, %cst {dimension_numbers = #tpu.dot_dimension_numbers<[1], [0], [0], [1], [0, 0, 1, 1], [], []>} : vector<64x32xbf16>, vector<32x68xbf16>, vector<64x68xf32> -> vector<64x68xf32>
    %4 = vector.extract_strided_slice %3 {offsets = [0, 0], sizes = [64, 32], strides = [1, 1]} : vector<64x68xf32> to vector<64x32xf32>
    %5 = vector.extract_strided_slice %3 {offsets = [0, 32], sizes = [64, 32], strides = [1, 1]} : vector<64x68xf32> to vector<64x32xf32>
    %6 = vector.extract_strided_slice %3 {offsets = [0, 64], sizes = [64, 4], strides = [1, 1]} : vector<64x68xf32> to vector<64x4xf32>
    %7 = arith.negf %6 : vector<64x4xf32>
    %8 = math.exp %7 : vector<64x4xf32>
    %cst_3 = arith.constant 1.000000e+00 : f32
    %9 = vector.broadcast %cst_3 : f32 to vector<64x4xf32>
    %10 = arith.addf %9, %8 : vector<64x4xf32>
    %11 = arith.divf %9, %10 : vector<64x4xf32>
    %12 = vector.extract_strided_slice %11 {offsets = [0, 0], sizes = [64, 1], strides = [1, 1]} : vector<64x4xf32> to vector<64x1xf32>
    %13 = vector.extract_strided_slice %11 {offsets = [0, 1], sizes = [64, 1], strides = [1, 1]} : vector<64x4xf32> to vector<64x1xf32>
    %14 = vector.extract_strided_slice %11 {offsets = [0, 2], sizes = [64, 1], strides = [1, 1]} : vector<64x4xf32> to vector<64x1xf32>
    %15 = vector.extract_strided_slice %11 {offsets = [0, 3], sizes = [64, 1], strides = [1, 1]} : vector<64x4xf32> to vector<64x1xf32>
    %c0_4 = arith.constant 0 : index
    %c0_5 = arith.constant 0 : index
    %16 = vector.load %arg2[%c0_4, %c0_5] : memref<64x32xbf16, #tpu.memory_space<vmem>>, vector<64x32xbf16>
    %17 = arith.extf %16 : vector<64x32xbf16> to vector<64x32xf32>
    %c0_6 = arith.constant 0 : index
    %c0_7 = arith.constant 0 : index
    %18 = vector.load %arg3[%c0_6, %c0_7] : memref<64x32xbf16, #tpu.memory_space<vmem>>, vector<64x32xbf16>
    %19 = arith.extf %18 : vector<64x32xbf16> to vector<64x32xf32>
    %20 = vector.broadcast %12 : vector<64x1xf32> to vector<64x32xf32>
    %21 = arith.mulf %17, %20 : vector<64x32xf32>
    %22 = vector.broadcast %13 : vector<64x1xf32> to vector<64x32xf32>
    %23 = arith.mulf %4, %22 : vector<64x32xf32>
    %24 = arith.addf %21, %23 : vector<64x32xf32>
    %c0_8 = arith.constant 0 : index
    %c0_9 = arith.constant 0 : index
    %25 = vector.load %arg4[%c0_8, %c0_9] : memref<64x1xf32, #tpu.memory_space<vmem>>, vector<64x1xf32>
    %26 = vector.broadcast %25 : vector<64x1xf32> to vector<64x32xf32>
    %27 = arith.mulf %24, %26 : vector<64x32xf32>
    %28 = vector.broadcast %14 : vector<64x1xf32> to vector<64x32xf32>
    %29 = arith.mulf %19, %28 : vector<64x32xf32>
    %30 = vector.broadcast %15 : vector<64x1xf32> to vector<64x32xf32>
    %31 = arith.mulf %5, %30 : vector<64x32xf32>
    %32 = arith.addf %29, %31 : vector<64x32xf32>
    %c0_10 = arith.constant 0 : index
    %c0_11 = arith.constant 0 : index
    %33 = vector.load %arg5[%c0_10, %c0_11] : memref<64x1xf32, #tpu.memory_space<vmem>>, vector<64x1xf32>
    %34 = vector.broadcast %33 : vector<64x1xf32> to vector<64x32xf32>
    %35 = arith.mulf %32, %34 : vector<64x32xf32>
    %36 = tpu.concatenate %27, %35 in 1 : vector<64x32xf32>, vector<64x32xf32> -> vector<64x64xf32>
    %37 = arith.truncf %36 : vector<64x64xf32> to vector<64x64xbf16>
    %c0_12 = arith.constant 0 : index
    %c0_13 = arith.constant 0 : index
    %38 = vector.load %arg7[%c0_12, %c0_13] : memref<64x64xbf16, #tpu.memory_space<vmem>>, vector<64x64xbf16>
    tpu.vector_store %arg7[%c0_12, %c0_13], %37 {strides = array<i32>} : memref<64x64xbf16, #tpu.memory_space<vmem>>, vector<64x64xbf16>,
    return
  }
  func.func @transform_0(%arg0: i32) -> (i32, i32) {
    %c0_i32 = arith.constant 0 : i32
    %c0_i32_0 = arith.constant 0 : i32
    return %arg0, %c0_i32 : i32, i32
  }
  func.func @transform_1(%arg0: i32) -> (i32, i32) {
    %c0_i32 = arith.constant 0 : i32
    %c0_i32_0 = arith.constant 0 : i32
    return %arg0, %c0_i32 : i32, i32
  }
  func.func @transform_2(%arg0: i32) -> (i32, i32) {
    %c0_i32 = arith.constant 0 : i32
    %c0_i32_0 = arith.constant 0 : i32
    return %arg0, %c0_i32 : i32, i32
  }
  func.func @transform_3(%arg0: i32) -> (i32, i32) {
    %c0_i32 = arith.constant 0 : i32
    %c0_i32_0 = arith.constant 0 : i32
    return %arg0, %c0_i32 : i32, i32
  }
  func.func @transform_4(%arg0: i32) -> (i32, i32) {
    %c0_i32 = arith.constant 0 : i32
    %c0_i32_0 = arith.constant 0 : i32
    return %arg0, %c0_i32 : i32, i32
  }
  func.func @transform_5(%arg0: i32) -> (i32, i32) {
    %c0_i32 = arith.constant 0 : i32
    %c0_i32_0 = arith.constant 0 : i32
    %c0_i32_1 = arith.constant 0 : i32
    return %c0_i32, %c0_i32_0 : i32, i32
  }
  func.func @transform_6(%arg0: i32) -> (i32, i32) {
    %c0_i32 = arith.constant 0 : i32
    %c0_i32_0 = arith.constant 0 : i32
    return %arg0, %c0_i32 : i32, i32
  }
}

</mosaic_0001>

<bundles_post_ra>
// kernel: tpu_custom_call.1
= control target key start
LH: loop header
LB: loop body
LE: loop exit
PB: predicated region body
PF: predicated region fallthrough
CT: control target
= control target key end

     0   :  { %s1752_s21 = smov 0   ;;  %s1754_s22 = smov 0   ;;  %s2062_s0 = inlined_call_operand.vmem [shape: f32[200,32], index: 0, kind: input, shape index: {}]   ;;  %s2063_s1 = inlined_call_operand.vmem [shape: bf16[200,32], index: 1, kind: input, shape index: {}]   ;;  %s2064_s2 = inlined_call_operand.vmem [shape: bf16[200,32], index: 2, kind: input, shape index: {}]   ;;  %s2065_s3 = inlined_call_operand.vmem [shape: f32[200,1], index: 3, kind: input, shape index: {}]   ;;  %s2066_s4 = inlined_call_operand.vmem [shape: f32[200,1], index: 4, kind: input, shape index: {}]   ;;  %s2067_s5 = inlined_call_operand.vmem [shape: bf16[32,68], index: 5, kind: input, shape index: {}]   ;;  %s2068_s6 = inlined_call_operand.vmem [shape: bf16[200,64], index: 6, kind: output, shape index: {}]  }
   0x1   :  { %s1756_s23 = smov 0  }
   0x2 LB: > { %s1765_s24 = sadd.s32 4294967295, %s1676_s23   ;;  %s1767_s25 = sadd.s32 1, %s1676_s23   ;;  %s1676_s23 = sphi %s1756_s23, %s2075_s23   ;;  %s1672_s22 = sphi %s1754_s22, %s2074_s22   ;;  %s1668_s21 = sphi %s1752_s21, %s2073_s21  }
   0x3   : > { %s171_s26 = ssub.s32 %s1676_s23, %s1767_s25  ;;  %s174_s27 = sadd.s32 1, %s1672_s22 }
   0x4   : > { %p172_p0 = scmp.eq.s32.totalorder %s171_s26, 0  ;;  %p184_p1 = scmp.ne.s32.totalorder %s1672_s22, %s1668_s21 }
   0x5   : > { %p185_p2 = scmp.eq.s32.totalorder %s1765_s24, 3  ;;  %p1330_p3 = scmp.ge.s32.totalorder %s1676_s23, 1 }
   0x6   : > { %s1775_s28 = scalar_select %p172_p0, %s1672_s22, %s174_s27  }
   0x7   : > { %p1777_p4 = por %p185_p2, %p184_p1  ;;  %p297_p5 = scmp.lt.s32.totalorder %s1676_s23, 5 }
   0x9   : > { %p298_p6 = pnand %p1330_p3, %p297_p5 }
   0xa   : > { %v1588_v0 = vld [vmem:[%s2067_s5] sm:$0xff] (!%p298_p6)   ;;  %s1785_s8 = sshll.u32 (!%p298_p6), %s1765_s24, 3  ;;  %v1589_v1 = vld [vmem:[%s2067_s5 + $0x8] sm:$0xff] (!%p298_p6)   ;;  %vm470_vm0 = vcmask (!%p298_p6), 261120   ;;  %v1710_v14 = vmov (!%p298_p6), 64   ;;  %v1711_v47 = vmov (!%p298_p6), 67  }
   0xb   : > { %301 = sbr.rel (%p298_p6) target bundleno = 735 (0x2df), region = 44  ;;  %p371_p7 = scmp.lt.s32.totalorder (!%p298_p6), %s1785_s8, 24  ;;  %1436 = vmatprep.subr.bf16.mxu0 (!%p298_p6), %v1588_v0  ;;  %1448 = vmatprep.subr.bf16.mxu1 (!%p298_p6), %v1588_v0  ;;  %v1712_v54 = vmov (!%p298_p6), 66   ;;  %v1713_v57 = vmov (!%p298_p6), 65   ;;  %v1714_v59 = vmov (!%p298_p6), 0   ;;  %vm1028_vm1 = vcmask (!%p298_p6), 519168  }
   0xc   : > { %1437 = vmatpush3.bf16.msra.mxu0 (!%p298_p6), %v1588_v0  ;;  %1450 = vmatpush3.bf16.msra.mxu1 (!%p298_p6), %v1588_v0  ;;  %s1715_s27 = smov (!%p298_p6), 96   ;;  %s363_s14 = sand.u32 (!%p298_p6), 1, %s1668_s21  }
   0xd   : > { %1438 = vmatprep.subr.bf16.mxu0 (!%p298_p6), %v1589_v1  ;;  %1449 = vmatprep.subr.bf16.mxu1 (!%p298_p6), %v1589_v1 }
   0xe   : > { %1548 = vset.pattern.permute.xlu0 (!%p298_p6), %v1710_v14  ;;  %1547 = vset.pattern.permute.xlu1 (!%p298_p6), %v1710_v14 }
  0x10   : > { %1439 = vmatpush3.bf16.msra.mxu0 (!%p298_p6), %v1589_v1  ;;  %1451 = vmatpush3.bf16.msra.mxu1 (!%p298_p6), %v1589_v1 }
  0x12   : > { %s1792_s11 = scalar_select %p371_p7, %s1785_s8, 24 }
  0x13   : > { %s1045_s21 = ssub.s32 (%p1777_p4), 25, %s1785_s8  ;;  %s1389_s17 = sshll.u32 (%p1777_p4), %s1765_s24, 5 }
  0x14   : > { %s1795_s12 = sshll.u32 %s1792_s11, 3  ;;  %s1335_s19 = sshll.u32 %s1792_s11, 2 }
  0x15   : > { %s374_s15 = scalar_lea.vmem %s2062_s0, %s1795_s12  ;;  %s1853_s18 = scalar_lea.vmem %s2066_s4, %s1795_s12 }
  0x16   : > { %v442_v2 = vld [vmem:[%s374_s15] sm:$0xff]  ;;  %v443_v3 = vld [vmem:[%s374_s15 + $0x8] sm:$0xff]  ;;  %v444_v7 = vld [vmem:[%s374_s15 + $0x10] sm:$0xff]  ;;  %s388_s26 = scalar_lea.vmem %s2063_s1, %s1335_s19  ;;  %s1909_s9 = scalar_lea.vmem %s2065_s3, %s1795_s12 }
  0x17   : > { %v446_v4 = vld [vmem:[%s374_s15 + $0x20] sm:$0xff]  ;;  %v450_v5 = vpack.c.bf16 %v443_v3, %v442_v2  ;;  %v447_v6 = vld [vmem:[%s374_s15 + $0x28] sm:$0xff]  ;;  %v445_v8 = vld [vmem:[%s374_s15 + $0x18] sm:$0xff]  ;;  %s402_s13 = scalar_lea.vmem %s2064_s2, %s1335_s19  ;;  %s1716_s11 = smov 32  }
  0x18   : > { %v452_v9 = vpack.c.bf16 %v447_v6, %v446_v4  ;;  %v451_v10 = vpack.c.bf16 %v445_v8, %v444_v7  ;;  %v448_v11 = vld [vmem:[%s374_s15 + $0x30] sm:$0xff]  ;;  %v449_v12 = vld [vmem:[%s374_s15 + $0x38] sm:$0xff]  ;;  %v901_v58 = vld [vmem:[%s1853_s18 + $0x8] sm:$0xff]  ;;  %s1331_s15 = sshll.u32 %s363_s14, 5  ;;  %p1046_p8 = scmp.lt.s32.totalorder (%p1777_p4), %s1045_s21, 8 }
  0x19   : > { %1440 = vmatprep.mubr.msk.bf16.mxu0 %vm470_vm0, %v450_v5  ;;  %v453_v13 = vpack.c.bf16 %v449_v12, %v448_v11  ;;  %v904_v60 = vld [vmem:[%s1853_s18 + $0x20] sm:$0xff]  ;;  %v906_v61 = vld [vmem:[%s1853_s18 + $0x30] sm:$0xff]  ;;  %v903_v0 = vld [vmem:[%s1853_s18 + $0x18] sm:$0xff]  ;;  %s1972_s16 = scalar_lea.vmem [#allocation2], %s1331_s15   ;;  %s2008_s20 = scalar_lea.vmem (%p1777_p4), %s2068_s6, %s1389_s17  }
  0x1a   : > { %1444 = vmatprep.mubr.msk.bf16.mxu1 %vm470_vm0, %v452_v9  ;;  %1441 = vmatmul.mubr.msk.bf16.vlgmr.msra.gmra.mrb[0].mxu0 %vm470_vm0, %v451_v10  ;;  %v900_v62 = vld [vmem:[%s1853_s18] sm:$0xff]  ;;  %v902_v63 = vld [vmem:[%s1853_s18 + $0x10] sm:$0xff]  ;;  %v905_v1 = vld [vmem:[%s1853_s18 + $0x28] sm:$0xff] }
  0x1b   : > { %1445 = vmatmul.mubr.msk.bf16.vlgmr.msra.gmra.mrb[0].mxu1 %vm470_vm0, %v453_v13  ;;  %v907_v2 = vld [vmem:[%s1853_s18 + $0x38] sm:$0xff]  ;;  %v1424_v3 = vld [vmem:[%s388_s26 + $0x8] sm:$0xff]   ;;  %v1393_v7 = vld [vmem:[%s388_s26] sm:$0xff]  }
  0x1c   : > { %v1426_v4 = vld [vmem:[%s388_s26 + $0x18] sm:$0xff]   ;;  %v1398_v5 = vunpack.c.l.bf16 %v1424_v3  ;;  %v1394_v12 = vunpack.c.l.bf16 %v1393_v7  ;;  %v1425_v13 = vld [vmem:[%s388_s26 + $0x10] sm:$0xff]  }
  0x1d   : > { %v1406_v6 = vunpack.c.l.bf16 %v1426_v4 }
  0xed   : > { %v1807_v15 = vpop.f32.mrb[0].mxu0 }
  0xee   : > { %v1350_v16 = vmul.f32 -1.442695, %v1807_v15  ;;  %v1810_v17 = vpop.f32.mrb[0].mxu1  ;;  %v1812_v18 = vpop.f32.mrb[1].mxu0 }
  0xef   : > { %v1354_v19 = vmul.f32 -1.442695, %v1810_v17  ;;  %v1348_v20 = vmul.f32 -1.442695, %v1812_v18  ;;  %v1816_v21 = vpop.f32.mrb[2].mxu0  ;;  %v1818_v22 = vpop.f32.mrb[1].mxu1 }
  0xf0   : > { %1590 = vpow2.f32 %v1350_v16  ;;  %v1820_v23 = vpop.f32.mrb[3].mxu0  ;;  %v1822_v24 = vpop.f32.mrb[2].mxu1  ;;  %v1352_v25 = vmul.f32 -1.442695, %v1818_v22  ;;  %v1351_v28 = vmul.f32 -1.442695, %v1816_v21 }
  0xf1   : > { %1592 = vpow2.f32 %v1354_v19  ;;  %v1825_v26 = vpop.f32.mrb[3].mxu1  ;;  %v1349_v27 = vmul.f32 -1.442695, %v1820_v23  ;;  %v1355_v34 = vmul.f32 -1.442695, %v1822_v24 }
  0xf2   : > { %1594 = vpow2.f32 %v1348_v20  ;;  %v1353_v43 = vmul.f32 -1.442695, %v1825_v26  ;;  %v1402_v20 = vunpack.c.l.bf16 %v1425_v13 }
  0xf3   : > { %1596 = vpow2.f32 %v1352_v25 }
  0xf4   : > { %1598 = vpow2.f32 %v1349_v27 }
  0xf5   : > { %1600 = vpow2.f32 %v1351_v28 }
  0xfa   : > { %v1591_v29 = vpop.eup %1590 }
  0xfb   : > { %v1593_v30 = vpop.eup %1592  ;;  %v574_v31 = vadd.f32 1.0, %v1591_v29  ;;  %v1395_v29 = vunpack.c.h.bf16 %v1393_v7 }
  0xfc   : > { %v1595_v32 = vpop.eup %1594  ;;  %v578_v33 = vadd.f32 1.0, %v1593_v30 }
  0xfd   : > { %1602 = vrcp.f32 %v574_v31  ;;  %v572_v35 = vadd.f32 1.0, %v1595_v32  ;;  %v1597_v36 = vpop.eup %1596 }
  0xfe   : > { %1604 = vrcp.f32 %v578_v33  ;;  %v576_v37 = vadd.f32 1.0, %v1597_v36  ;;  %v1599_v38 = vpop.eup %1598  ;;  %v1399_v33 = vunpack.c.h.bf16 %v1424_v3  ;;  %v724_v3 = vld [vmem:[%s1909_s9] sm:$0xff] }
  0xff   : > { %1606 = vpow2.f32 %v1355_v34  ;;  %v1601_v39 = vpop.eup %1600  ;;  %v573_v40 = vadd.f32 1.0, %v1599_v38 }
 0x100   : > { %1608 = vrcp.f32 %v572_v35  ;;  %v575_v45 = vadd.f32 1.0, %v1601_v39 }
 0x101   : > { %1610 = vrcp.f32 %v576_v37  ;;  %v1407_v37 = vunpack.c.h.bf16 %v1426_v4 }
 0x102   : > { %1612 = vrcp.f32 %v573_v40 }
 0x103   : > { %1614 = vpow2.f32 %v1353_v43 }
 0x104   : > { %1616 = vrcp.f32 %v575_v45  ;;  %v1403_v45 = vunpack.c.h.bf16 %v1425_v13  ;;  %v727_v13 = vld [vmem:[%s1909_s9 + $0x18] sm:$0xff] }
 0x107   : > { %v1830_v41 = vpop.eup %1602 }
 0x108   : > { %v1832_v42 = vpop.eup %1604  ;;  %640 = vperm.xlu1 %1547, %v1830_v41  }
 0x109   : > { %660 = vperm.xlu0 %1548, %v1832_v42   ;;  %v1607_v44 = vpop.eup %1606 }
 0x10a   : > { %v1609_v46 = vpop.eup %1608  ;;  %v579_v48 = vadd.f32 1.0, %v1607_v44 }
 0x10b   : > { %v1611_v49 = vpop.eup %1610 }
 0x10c   : > { %1549 = vset.pattern.permute.xlu1 %v1711_v47  ;;  %1618 = vrcp.f32 %v579_v48  ;;  %v1838_v50 = vpop.eup %1612 }
 0x10d   : > { %630 = vperm.xlu0 %1548, %v1609_v46   ;;  %845 = vperm.xlu1 %1549, %v1832_v42   ;;  %v1615_v51 = vpop.eup %1614 }
 0x10e   : > { %v1617_v52 = vpop.eup %1616  ;;  %v577_v53 = vadd.f32 1.0, %v1615_v51 }
 0x110   : > { %1620 = vrcp.f32 %v577_v53 }
 0x111   : > { %650 = vperm.xlu0 %1548, %v1611_v49   ;;  %821 = vperm.xlu1 %1549, %v1609_v46  }
 0x115   : > { %635 = vperm.xlu0 %1548, %v1838_v50   ;;  %837 = vperm.xlu1 %1549, %v1611_v49  }
 0x116   : > { %v1842_v55 = vpop.eup %1618 }
 0x119   : > { %1555 = vset.pattern.permute.xlu0 %v1712_v54  ;;  %1550 = vset.pattern.permute.xlu1 %v1710_v14 }
 0x11a   : > { %781 = vperm.xlu0 %1555, %v1609_v46   ;;  %645 = vperm.xlu1 %1550, %v1617_v52   ;;  %v1621_v56 = vpop.eup %1620 }
 0x11e   : > { %793 = vperm.xlu0 %1555, %v1617_v52   ;;  %665 = vperm.xlu1 %1550, %v1842_v55  }
 0x122   : > { %1557 = vset.pattern.permute.xlu0 %v1711_v47  ;;  %1551 = vset.pattern.permute.xlu1 %v1711_v47 }
 0x123   : > { %829 = vperm.xlu0 %1557, %v1830_v41   ;;  %833 = vperm.xlu1 %1551, %v1617_v52  }
 0x127   : > { %849 = vperm.xlu0 %1557, %v1842_v55   ;;  %1552 = vset.pattern.permute.xlu1 %v1710_v14 }
 0x128   : > { %655 = vperm.xlu1 %1552, %v1621_v56  }
 0x12b   : > { %841 = vperm.xlu0 %1557, %v1621_v56  }
 0x12c   : > { %1553 = vset.pattern.permute.xlu1 %v1711_v47 }
 0x12d   : > { %825 = vperm.xlu1 %1553, %v1838_v50  }
 0x12f   : > { %1558 = vset.pattern.permute.xlu0 %v1712_v54 }
 0x130   : > { %809 = vperm.xlu0 %1558, %v1842_v55  }
 0x131   : > { %1554 = vset.pattern.permute.xlu1 %v1713_v57 }
 0x132   : > { %689 = vperm.xlu1 %1554, %v1617_v52  }
 0x134   : > { %1560 = vset.pattern.permute.xlu0 %v1714_v59 }
 0x135   : > { %915 = vperm.xlu0 %1560, %v901_v58  }
 0x136   : > { %693 = vperm.xlu1 %1554, %v1611_v49  }
 0x139   : > { %930 = vperm.xlu0 %1560, %v904_v60  }
 0x13a   : > { %701 = vperm.xlu1 %1554, %v1832_v42  }
 0x13d   : > { %940 = vperm.xlu0 %1560, %v906_v61  }
 0x13e   : > { %1556 = vset.pattern.permute.xlu1 %v1712_v54 }
 0x13f   : > { %789 = vperm.xlu1 %1556, %v1830_v41  }
 0x141   : > { %1561 = vset.pattern.permute.xlu0 %v1713_v57 }
 0x142   : > { %677 = vperm.xlu0 %1561, %v1609_v46  }
 0x143   : > { %797 = vperm.xlu1 %1556, %v1611_v49  }
 0x146   : > { %685 = vperm.xlu0 %1561, %v1830_v41  }
 0x147   : > { %805 = vperm.xlu1 %1556, %v1832_v42  }
 0x14a   : > { %697 = vperm.xlu0 %1561, %v1621_v56  }
 0x14b   : > { %1559 = vset.pattern.permute.xlu1 %v1714_v59 }
 0x14c   : > { %910 = vperm.xlu1 %1559, %v900_v62  }
 0x14e   : > { %1564 = vset.pattern.permute.xlu0 %v1712_v54 }
 0x14f   : > { %801 = vperm.xlu0 %1564, %v1621_v56  }
 0x150   : > { %920 = vperm.xlu1 %1559, %v902_v63  }
 0x153   : > { %1565 = vset.pattern.permute.xlu0 %v1713_v57 }
 0x154   : > { %925 = vperm.xlu1 %1559, %v903_v0  }
 0x158   : > { %935 = vperm.xlu1 %1559, %v905_v1   ;;  %v726_v1 = vld [vmem:[%s1909_s9 + $0x10] sm:$0xff] }
 0x15c   : > { %945 = vperm.xlu1 %1559, %v907_v2  }
 0x160   : > { %1562 = vset.pattern.permute.xlu1 %v1713_v57 }
 0x161   : > { %681 = vperm.xlu1 %1562, %v1838_v50  }
 0x165   : > { %1563 = vset.pattern.permute.xlu1 %v1712_v54 }
 0x166   : > { %785 = vperm.xlu1 %1563, %v1838_v50  }
 0x16a   : > { %1566 = vset.pattern.permute.xlu1 %v1714_v59 }
 0x187   : > { %v641_v8 = vpop.permute.xlu1 %640 }
 0x188   : > { %v661_v9 = vpop.permute.xlu0 %660  ;;  %v1879_v10 = vmul.f32 %v1398_v5, %v641_v8 }
 0x189   : > { %v1881_v11 = vmul.f32 %v1406_v6, %v661_v9 }
 0x18c   : > { %v631_v14 = vpop.permute.xlu0 %630  ;;  %v846_v16 = vpop.permute.xlu1 %845 }
 0x18d   : > { %v1883_v19 = vmul.f32 %v1394_v12, %v631_v14  ;;  %v858_v54 = vmul.f32 %v1810_v17, %v846_v16  ;;  %v731_v12 = vld [vmem:[%s1909_s9 + $0x38] sm:$0xff]  ;;  %v728_v16 = vld [vmem:[%s1909_s9 + $0x20] sm:$0xff] }
 0x190   : > { %v651_v25 = vpop.permute.xlu0 %650  ;;  %v822_v27 = vpop.permute.xlu1 %821 }
 0x191   : > { %v672_v28 = vmul.f32 %v1402_v20, %v651_v25  ;;  %v852_v47 = vmul.f32 %v822_v27, %v1812_v18 }
 0x194   : > { %v636_v30 = vpop.permute.xlu0 %635  ;;  %v838_v31 = vpop.permute.xlu1 %837 }
 0x195   : > { %v1885_v32 = vmul.f32 %v1395_v29, %v636_v30  ;;  %v856_v51 = vmul.f32 %v838_v31, %v1818_v22 }
 0x199   : > { %v1887_v34 = vpop.permute.xlu0 %781  ;;  %v646_v35 = vpop.permute.xlu1 %645 }
 0x19a   : > { %v671_v36 = vmul.f32 %v1399_v33, %v646_v35 }
 0x19d   : > { %v1889_v38 = vpop.permute.xlu0 %793  ;;  %v666_v39 = vpop.permute.xlu1 %665 }
 0x19e   : > { %v1891_v40 = vmul.f32 %v1407_v37, %v666_v39 }
 0x1a2   : > { %v830_v41 = vpop.permute.xlu0 %829  ;;  %v834_v42 = vpop.permute.xlu1 %833 }
 0x1a3   : > { %v854_v43 = vmul.f32 %v1807_v15, %v830_v41  ;;  %v855_v44 = vmul.f32 %v1816_v21, %v834_v42 }
 0x1a5   : > { %872 = vrot.lane.b32.xlu0 %v854_v43, %s1715_s27  ;;  %874 = vrot.lane.b32.xlu1 %v855_v44, %s1715_s27 }
 0x1a6   : > { %v850_v46 = vpop.permute.xlu0 %849 }
 0x1a7   : > { %v656_v48 = vpop.permute.xlu1 %655  ;;  %v859_v63 = vmul.f32 %v1822_v24, %v850_v46 }
 0x1a8   : > { %v673_v49 = vmul.f32 %v1403_v45, %v656_v48 }
 0x1a9   : > { %868 = vrot.lane.b32.xlu0 %v852_v47, %s1715_s27  ;;  %v1409_v47 = vld [vmem:[%s402_s13] sm:$0xff]  }
 0x1aa   : > { %v842_v50 = vpop.permute.xlu0 %841 }
 0x1ab   : > { %v857_v57 = vmul.f32 %v842_v50, %v1825_v26 }
 0x1ac   : > { %v826_v52 = vpop.permute.xlu1 %825 }
 0x1ad   : > { %v853_v53 = vmul.f32 %v826_v52, %v1820_v23  ;;  %876 = vrot.lane.b32.xlu0 %v856_v51, %s1715_s27 }
 0x1af   : > { %870 = vrot.lane.b32.xlu1 %v853_v53, %s1715_s27  ;;  %v1899_v56 = vpop.permute.xlu0 %809  ;;  %v1428_v53 = vld [vmem:[%s402_s13 + $0x10] sm:$0xff]  }
 0x1b1   : > { %880 = vrot.lane.b32.xlu0 %v858_v54, %s1715_s27  ;;  %v690_v58 = vpop.permute.xlu1 %689 }
 0x1b2   : > { %v711_v60 = vmul.f32 %v1816_v21, %v690_v58 }
 0x1b3   : > { %878 = vrot.lane.b32.xlu1 %v857_v57, %s1715_s27  ;;  %v1411_v57 = vunpack.c.h.bf16 %v1409_v47 }
 0x1b4   : > { %v1903_v61 = vpop.permute.xlu0 %915  ;;  %v1911_v62 = vadd.f32 %v711_v60, %v671_v36 }
 0x1b5   : > { %705 = vperm.xlu0 %1565, %v1842_v55   ;;  %v694_v0 = vpop.permute.xlu1 %693  ;;  %v729_v55 = vld [vmem:[%s1909_s9 + $0x28] sm:$0xff] }
 0x1b6   : > { %v712_v21 = vmul.f32 %v694_v0, %v1818_v22  ;;  %v725_v22 = vld [vmem:[%s1909_s9 + $0x8] sm:$0xff]  ;;  %v1429_v0 = vld [vmem:[%s402_s13 + $0x18] sm:$0xff]  }
 0x1b7   : > { %882 = vrot.lane.b32.xlu1 %v859_v63, %s1715_s27  ;;  %v1418_v63 = vunpack.c.l.bf16 %v1428_v53 }
 0x1b8   : > { %v1917_v2 = vpop.permute.xlu0 %930  ;;  %v1920_v4 = vadd.f32 %v712_v21, %v672_v28  ;;  %v730_v28 = vld [vmem:[%s1909_s9 + $0x30] sm:$0xff]  ;;  %v1419_v21 = vunpack.c.h.bf16 %v1428_v53 }
 0x1b9   : > { %1567 = vset.pattern.permute.xlu0 %v1714_v59  ;;  %v702_v5 = vpop.permute.xlu1 %701 }
 0x1ba   : > { %v714_v6 = vmul.f32 %v1810_v17, %v702_v5  ;;  %744 = vperm.xlu0 %1567, %v726_v1  }
 0x1bb   : > { %734 = vperm.xlu1 %1566, %v724_v3  }
 0x1bc   : > { %v1925_v7 = vpop.permute.xlu0 %940  ;;  %v1929_v8 = vadd.f32 %v714_v6, %v1881_v11 }
 0x1be   : > { %759 = vperm.xlu0 %1567, %v729_v55   ;;  %v790_v9 = vpop.permute.xlu1 %789  ;;  %v1422_v55 = vunpack.c.l.bf16 %v1429_v0 }
 0x1bf   : > { %739 = vperm.xlu1 %1566, %v725_v22  }
 0x1c1   : > { %v678_v59 = vpop.permute.xlu0 %677 }
 0x1c2   : > { %v708_v14 = vmul.f32 %v678_v59, %v1812_v18  ;;  %769 = vperm.xlu0 %1567, %v731_v12   ;;  %v798_v17 = vpop.permute.xlu1 %797 }
 0x1c3   : > { %749 = vperm.xlu1 %1566, %v727_v13   ;;  %v816_v6 = vmul.f32 %v1418_v63, %v798_v17 }
 0x1c4   : > { %v1936_v20 = vadd.f32 %v708_v14, %v1883_v19 }
 0x1c5   : > { %v686_v25 = vpop.permute.xlu0 %685 }
 0x1c6   : > { %v710_v11 = vmul.f32 %v1807_v15, %v686_v25  ;;  %v806_v27 = vpop.permute.xlu1 %805 }
 0x1c7   : > { %754 = vperm.xlu1 %1566, %v728_v16   ;;  %v818_v25 = vmul.f32 %v1422_v55, %v806_v27 }
 0x1c8   : > { %v1941_v29 = vadd.f32 %v710_v11, %v1879_v10 }
 0x1c9   : > { %v698_v30 = vpop.permute.xlu0 %697 }
 0x1ca   : > { %v713_v18 = vmul.f32 %v698_v30, %v1825_v26  ;;  %v1427_v26 = vld [vmem:[%s402_s13 + $0x8] sm:$0xff]  }
 0x1cb   : > { %764 = vperm.xlu1 %1566, %v730_v28   ;;  %v911_v31 = vpop.permute.xlu1 %910  ;;  %v1415_v10 = vunpack.c.h.bf16 %v1427_v26  ;;  %v1414_v42 = vunpack.c.l.bf16 %v1427_v26 }
 0x1cc   : > { %v1944_v33 = vadd.f32 %v713_v18, %v673_v49 }
 0x1cd   : > { %v815_v45 = vmul.f32 %v1415_v10, %v1889_v38  ;;  %v814_v46 = vmul.f32 %v1414_v42, %v790_v9  ;;  %v1423_v9 = vunpack.c.h.bf16 %v1429_v0 }
 0x1ce   : > { %v802_v43 = vpop.permute.xlu0 %801 }
 0x1cf   : > { %v921_v35 = vpop.permute.xlu1 %920  ;;  %v817_v12 = vmul.f32 %v1419_v21, %v802_v43  ;;  %v819_v30 = vmul.f32 %v1423_v9, %v1899_v56 }
 0x1d3   : > { %v926_v19 = vpop.permute.xlu1 %925 }
 0x1d7   : > { %v936_v36 = vpop.permute.xlu1 %935 }
 0x1db   : > { %v946_v37 = vpop.permute.xlu1 %945 }
 0x1e0   : > { %v682_v39 = vpop.permute.xlu1 %681 }
 0x1e1   : > { %v709_v15 = vmul.f32 %v682_v39, %v1820_v23 }
 0x1e3   : > { %v1948_v41 = vadd.f32 %v709_v15, %v1885_v32  ;;  %v1410_v32 = vunpack.c.l.bf16 %v1409_v47 }
 0x1e5   : > { %v786_v44 = vpop.permute.xlu1 %785  ;;  %v812_v60 = vmul.f32 %v1410_v32, %v1887_v34 }
 0x1e6   : > { %v813_v1 = vmul.f32 %v1411_v57, %v786_v44 }
 0x217   : > { %v873_v48 = vpop.permute.xlu0 %872  ;;  %v875_v49 = vpop.permute.xlu1 %874 }
 0x218   : > { %v894_v23 = vadd.f32 %v873_v48, %v814_v46  ;;  %v895_v50 = vadd.f32 %v875_v49, %v815_v45 }
 0x21a   : > { %v950_v51 = vmul.f32 %v921_v35, %v894_v23  ;;  %v951_v52 = vmul.f32 %v926_v19, %v895_v50 }
 0x21b   : > { %v869_v54 = vpop.permute.xlu0 %868 }
 0x21c   : > { %v1568_v58 = vpack.i.bf16 %v951_v52, %v950_v51  ;;  %v892_v3 = vadd.f32 %v869_v54, %v812_v60 }
 0x21e   : > { %1569 = vrot.lane.b32.xlu0 %v1568_v58, %s1716_s11  ;;  %v948_v13 = vmul.f32 %v911_v31, %v892_v3 }
 0x21f   : > { %v877_v38 = vpop.permute.xlu0 %876 }
 0x220   : > { %v896_v59 = vadd.f32 %v877_v38, %v816_v6 }
 0x221   : > { %v871_v5 = vpop.permute.xlu1 %870 }
 0x222   : > { %v893_v22 = vadd.f32 %v871_v5, %v813_v1  ;;  %v952_v18 = vmul.f32 %v1917_v2, %v896_v59 }
 0x223   : > { %v881_v34 = vpop.permute.xlu0 %880 }
 0x224   : > { %v949_v14 = vmul.f32 %v1903_v61, %v893_v22  ;;  %v898_v35 = vadd.f32 %v881_v34, %v818_v25 }
 0x225   : > { %v879_v16 = vpop.permute.xlu1 %878 }
 0x226   : > { %v897_v11 = vadd.f32 %v879_v16, %v817_v12  ;;  %v1573_v28 = vpack.i.bf16 %v949_v14, %v948_v13  ;;  %v954_v15 = vmul.f32 %v1925_v7, %v898_v35 }
 0x228   : > { %v953_v19 = vmul.f32 %v936_v36, %v897_v11  ;;  %1574 = vrot.lane.b32.xlu1 %v1573_v28, %s1716_s11 }
 0x229   : > { %v883_v17 = vpop.permute.xlu1 %882 }
 0x22a   : > { %v899_v39 = vadd.f32 %v883_v17, %v819_v30  ;;  %v1578_v31 = vpack.i.bf16 %v953_v19, %v952_v18 }
 0x22c   : > { %v955_v61 = vmul.f32 %v946_v37, %v899_v39  ;;  %1579 = vrot.lane.b32.xlu1 %v1578_v31, %s1716_s11 }
 0x22e   : > { %v1583_v27 = vpack.i.bf16 %v955_v61, %v954_v15 }
 0x230   : > { %1584 = vrot.lane.b32.xlu0 %v1583_v27, %s1716_s11 }
 0x234   : > { %v706_v26 = vpop.permute.xlu0 %705 }
 0x235   : > { %v715_v56 = vmul.f32 %v1822_v24, %v706_v26 }
 0x237   : > { %v723_v2 = vadd.f32 %v715_v56, %v1891_v40 }
 0x239   : > { %v745_v10 = vpop.permute.xlu0 %744 }
 0x23a   : > { %v735_v36 = vpop.permute.xlu1 %734  ;;  %v774_v37 = vmul.f32 %v745_v10, %v1941_v29 }
 0x23b   : > { %v772_v29 = vmul.f32 %v735_v36, %v1936_v20 }
 0x23d   : > { %v760_v43 = vpop.permute.xlu0 %759 }
 0x23e   : > { %v740_v42 = vpop.permute.xlu1 %739  ;;  %v777_v38 = vmul.f32 %v760_v43, %v1944_v33 }
 0x23f   : > { %v773_v51 = vmul.f32 %v740_v42, %v1948_v41 }
 0x241   : > { %v770_v45 = vpop.permute.xlu0 %769 }
 0x242   : > { %v750_v44 = vpop.permute.xlu1 %749  ;;  %v779_v55 = vmul.f32 %v770_v45, %v723_v2 }
 0x243   : > { %v775_v47 = vmul.f32 %v750_v44, %v1911_v62 }
 0x246   : > { %v755_v46 = vpop.permute.xlu1 %754 }
 0x247   : > { %v776_v0 = vmul.f32 %v755_v46, %v1920_v4 }
 0x24a   : > { %v765_v32 = vpop.permute.xlu1 %764 }
 0x24b   : > { %v778_v33 = vmul.f32 %v765_v32, %v1929_v8 }
 0x290   : > { %v1570_v7 = vpop.permute.xlu0 %1569 }
 0x291   : > { %v1572_v48 = vunpack.i.h.bf16 %v1570_v7  ;;  %v1571_v49 = vunpack.i.l.bf16 %v1570_v7 }
 0x293   : > { %v991_v24 = vsel %vm470_vm0, %v775_v47, %v1572_v48  ;;  %v990_v40 = vsel %vm470_vm0, %v774_v37, %v1571_v49 }
 0x294   : > { %v1384_v23 = vpack.c.bf16 %v991_v24, %v991_v24  ;;  %v1383_v50 = vpack.c.bf16 %v990_v40, %v990_v40 }
 0x296   : > { %1031 = vst.msk [vmem:[%s1972_s16 + $0x8] sm:$0xf] %vm1028_vm1, %v1383_v50  ;;  %1032 = vst.msk [vmem:[%s1972_s16 + $0xc] sm:$0xf] %vm1028_vm1, %v1384_v23 }
 0x29a   : > { %v1575_v62 = vpop.permute.xlu1 %1574 }
 0x29b   : > { %v1577_v52 = vunpack.i.h.bf16 %v1575_v62  ;;  %v1576_v53 = vunpack.i.l.bf16 %v1575_v62 }
 0x29d   : > { %v989_v54 = vsel %vm470_vm0, %v773_v51, %v1577_v52  ;;  %v988_v57 = vsel %vm470_vm0, %v772_v29, %v1576_v53 }
 0x29e   : > { %v1382_v58 = vpack.c.bf16 %v989_v54, %v989_v54  ;;  %v1381_v60 = vpack.c.bf16 %v988_v57, %v988_v57  ;;  %v1580_v63 = vpop.permute.xlu1 %1579 }
 0x29f   : > { %v1582_v21 = vunpack.i.h.bf16 %v1580_v63  ;;  %v1581_v1 = vunpack.i.l.bf16 %v1580_v63 }
 0x2a0   : > { %1029 = vst.msk [vmem:[%s1972_s16] sm:$0xf] %vm1028_vm1, %v1381_v60  ;;  %1030 = vst.msk [vmem:[%s1972_s16 + $0x4] sm:$0xf] %vm1028_vm1, %v1382_v58 }
 0x2a1   : > { %v992_v20 = vsel %vm470_vm0, %v776_v0, %v1581_v1  ;;  %v993_v41 = vsel %vm470_vm0, %v777_v38, %v1582_v21 }
 0x2a2   : > { %v1385_v3 = vpack.c.bf16 %v992_v20, %v992_v20  ;;  %v1386_v5 = vpack.c.bf16 %v993_v41, %v993_v41  ;;  %v1585_v6 = vpop.permute.xlu0 %1584  ;;  %1043 = sbr.rel (!%p1777_p4) target bundleno = 735 (0x2df), region = 48 }
 0x2a3   : > { %v1587_v22 = vunpack.i.h.bf16 %v1585_v6  ;;  %v1586_v4 = vunpack.i.l.bf16 %v1585_v6 }
 0x2a4   : > { %1033 = vst.msk [vmem:[%s1972_s16 + $0x10] sm:$0xf] %vm1028_vm1, %v1385_v3  ;;  %1034 = vst.msk [vmem:[%s1972_s16 + $0x14] sm:$0xf] %vm1028_vm1, %v1386_v5 }
 0x2a5   : > { %v995_v9 = vsel %vm470_vm0, %v779_v55, %v1587_v22  ;;  %v994_v12 = vsel %vm470_vm0, %v778_v33, %v1586_v4 }
 0x2a6   : > { %v1388_v13 = vpack.c.bf16 %v995_v9, %v995_v9  ;;  %v1387_v59 = vpack.c.bf16 %v994_v12, %v994_v12 }
 0x2a8   : > { %1035 = vst.msk [vmem:[%s1972_s16 + $0x18] sm:$0xf] %vm1028_vm1, %v1387_v59  ;;  %1036 = vst.msk [vmem:[%s1972_s16 + $0x1c] sm:$0xf] %vm1028_vm1, %v1388_v13 }
 0x2a9   : > { %s2077_s21 = smov (!%p1046_p8, %s1045_s21), 8 }
 0x2aa   : > { %s1366_s23 = sshll.u32 %s2077_s21, 6 }
 0x2ab   : > { %p1369_p9 = scmp.eq.s32.totalorder %s1366_s23, 0 }
 0x2ac   : > { %s2014_s26 = sshrl.u32 (!%p1369_p9), %s2077_s21, 3 }
 0x2ad   : > { %1054 = sbr.rel (%p1369_p9) target bundleno = 735 (0x2df), region = 52  ;;  %p1370_p10 = scmp.le.s32.totalorder (!%p1369_p9), %s2014_s26, 0 }
 0x2b4   : > { %1259 = sbr.rel (%p1370_p10) target bundleno = 714 (0x2ca), region = 136  ;;  %s2070_s24 = smov (!%p1370_p10), %s2008_s20 }
 0x2b5   : > { %s2071_s29 = smov (!%p1370_p10), %s1972_s16  ;;  %s2023_s8 = smov (!%p1370_p10), 0  }
 0x2b6   : > { %s2025_s27 = smov (!%p1370_p10), 0  }
 0x2bb LB: >> { %v1070_v8 = vld [vmem:[%s1684_s29] sm:$0xf]  ;;  %v1072_v14 = vld [vmem:[%s1684_s29 + $0x4] sm:$0xf]  ;;  %v1074_v34 = vld [vmem:[%s1684_s29 + $0x8] sm:$0xf]  ;;  %s1692_s27 = sphi %s2025_s27, %s1064_s27   ;;  %s1688_s8 = sphi %s2023_s8, %s2072_s8   ;;  %s1684_s29 = sphi %s2071_s29, %s1091_s29   ;;  %s1680_s24 = sphi %s2070_s24, %s1092_s24  }
 0x2bc   : >> { %1071 = vst [vmem:[%s1680_s24] sm:$0xf] %v1070_v8  ;;  %1073 = vst [vmem:[%s1680_s24 + $0x4] sm:$0xf] %v1072_v14  ;;  %v1076_v16 = vld [vmem:[%s1684_s29 + $0xc] sm:$0xf]  ;;  %s1086_s30 = sadd.s32 1, %s1688_s8 }
 0x2bd   : >> { %1075 = vst [vmem:[%s1680_s24 + $0x8] sm:$0xf] %v1074_v34  ;;  %v1078_v25 = vld [vmem:[%s1684_s29 + $0x10] sm:$0xf]  ;;  %v1080_v11 = vld [vmem:[%s1684_s29 + $0x14] sm:$0xf]  ;;  %p1087_p11 = scmp.ge.s32.totalorder %s1086_s30, %s2014_s26 }
 0x2be   : >> { %1077 = vst [vmem:[%s1680_s24 + $0xc] sm:$0xf] %v1076_v16  ;;  %1079 = vst [vmem:[%s1680_s24 + $0x10] sm:$0xf] %v1078_v25  ;;  %v1082_v28 = vld [vmem:[%s1684_s29 + $0x18] sm:$0xf] }
 0x2bf   : >> { %1081 = vst [vmem:[%s1680_s24 + $0x14] sm:$0xf] %v1080_v11  ;;  %v1084_v30 = vld [vmem:[%s1684_s29 + $0x1c] sm:$0xf]  ;;  %1083 = vst [vmem:[%s1680_s24 + $0x18] sm:$0xf] %v1082_v28 }
 0x2c0   : >> { %1085 = vst [vmem:[%s1680_s24 + $0x1c] sm:$0xf] %v1084_v30  ;;  %s2079_s30 = smov (%p1087_p11, %s1086_s30), 0  ;;  %s1064_s27 = sadd.s32 1, %s1692_s27  }
 0x2c1   : >> { %s1371_s7 = sshll.u32 %s2079_s30, 5  ;;  %p1063_p12 = scmp.ge.s32.totalorder %s1064_s27, %s2014_s26 }
 0x2c2   : >> { %s1091_s29 = scalar_lea.vmem %s1972_s16, %s1371_s7 [#allocation2]   ;;  %s1092_s24 = scalar_lea.vmem %s2008_s20, %s1371_s7  }
 0x2c3   : >> { %s2072_s8 = smov %s2079_s30  ;;  %1066 = sbr.rel (!%p1063_p12) target bundleno = 699 (0x2bb), region = 142 }
 0x2ca PF: > { %s2044_s9 = sand.u32 7, %s2077_s21   ;;  %s1390_s10 = sshll.u32 %s2014_s26, 5 }
 0x2cb   : > { %s1097_s12 = scalar_lea.vmem %s1972_s16, %s1390_s10 [#allocation2]   ;;  %s1099_s13 = scalar_lea.vmem %s2008_s20, %s1390_s10  }
 0x2cc   : > { %p1376_p13 = scmp.le.s32.totalorder %s2044_s9, 0 }
 0x2cd   : > { %s1694_s11 = smov (!%p1376_p13), %s1099_s13   ;;  %s1698_s14 = smov (!%p1376_p13), %s1097_s12  }
 0x2ce   : > { %1273 = sbr.rel (%p1376_p13) target bundleno = 735 (0x2df), region = 147  ;;  %s1702_s15 = smov (!%p1376_p13), 0  }
 0x2cf   : > { %s1706_s17 = smov (!%p1376_p13), 0  }
 0x2d5 LB: >> { %v1109_v18 = vld [vmem:[%s1700_s14] sm:$0xf]  ;;  %s1111_s21 = sadd.s32 1, %s1704_s15  ;;  %s1103_s17 = sadd.s32 1, %s1708_s17   ;;  %s1708_s17 = sphi %s1706_s17, %s1103_s17   ;;  %s1704_s15 = sphi %s1702_s15, %s1703_s15   ;;  %s1700_s14 = sphi %s1698_s14, %s1116_s14   ;;  %s1696_s11 = sphi %s1694_s11, %s1117_s11  }
 0x2d6   : >> { %1110 = vst [vmem:[%s1696_s11] sm:$0xf] %v1109_v18  ;;  %p1112_p0 = scmp.ge.s32.totalorder %s1111_s21, %s2044_s9  ;;  %p1102_p1 = scmp.ge.s32.totalorder %s1103_s17, %s2044_s9 }
 0x2d8   : >> { %s2081_s21 = smov (%p1112_p0, %s1111_s21), 0  ;;  %1105 = sbr.rel (!%p1102_p1) target bundleno = 725 (0x2d5), region = 153 }
 0x2d9   : >> { %s1377_s16 = sshll.u32 %s2081_s21, 2  ;;  %s1703_s15 = smov %s2081_s21  }
 0x2da   : >> { %s1116_s14 = scalar_lea.vmem %s1097_s12, %s1377_s16 [#allocation2]   ;;  %s1117_s11 = scalar_lea.vmem %s1099_s13, %s1377_s16  }
 0x2df PF: > { %p13_p2 = scmp.ge.s32.totalorder %s1767_s25, 6   ;;  %s2073_s21 = smov %s1672_s22 }
 0x2e0   : > { %s2074_s22 = smov %s1775_s28  ;;  %s2075_s23 = smov %s1767_s25 }
 0x2e1   :  { %15 = sbr.rel (!%p13_p2) target bundleno = 2 (0x2), region = 164 }

</bundles_post_ra>
